<compile_context>
chip_gen: v6e
topology: v6e:2x2x1
jax: 0.10.0
libtpu: 0.0.40
codegen_flags: <defaults>
</compile_context>

<pallas_src>
import jax
import jax.numpy as jnp
from jax import lax
from jax.experimental import pallas as pl
from jax.experimental.pallas import tpu as pltpu

KH = KW = 4
STRIDE = 2
PAD = 1
EPS = 1e-5           # PyTorch InstanceNorm2d default eps
NEG_SLOPE = 0.2      # LeakyReLU slope

# Sub-pixel phase decomposition tables (validated against lax.conv_general_dilated):
#   output row oh = 2m+ph uses padded-input rows m+OFF[ph][0], m+OFF[ph][1]
#   with ConvTranspose kernel rows                KTAP[ph][0],  KTAP[ph][1]   (same for width).
OFF = ((0, 1), (1, 2))
KTAP = ((3, 1), (2, 0))


def upconv_kernel(patch_ref, w_ref, gb_ref, out_ref, z_ref):
    # patch_ref: (9*Cin, P)        bf16 -- phase-invariant, de-duplicated im2col of this sample
    # w_ref    : (4, TCout, 9*Cin) bf16 -- per-phase ConvTranspose taps (unused taps zero)
    # gb_ref   : (TCout, 2)        f32  -- [:,0]=gamma, [:,1]=beta
    # out_ref  : (4, TCout, P)     bf16 -- 4 sub-pixel phases of the upsampled output
    # z_ref    : (4, TCout, P)     f32  -- VMEM scratch: un-normalized phase outputs
    p_pix = patch_ref.shape[1]
    tcout = out_ref.shape[1]
    inv_n = 1.0 / float(4 * p_pix)

    # Sweep 1: one MXU GEMM per sub-pixel phase; IN statistics accumulate in vregs.
    # The ConvTranspose bias is omitted: a per-channel constant shift cancels exactly under
    # the affine InstanceNorm that immediately follows (do NOT reuse for a bias+no-norm variant).
    s = jnp.zeros((tcout, 1), jnp.float32)
    ss = jnp.zeros((tcout, 1), jnp.float32)
    for p in range(4):                                   # static 4-way unroll, no grid axis
        z = jnp.dot(w_ref[p], patch_ref[...], preferred_element_type=jnp.float32)  # (TCout, P)
        z_ref[p] = z                                     # stash pre-norm values in f32
        s = s + jnp.sum(z, axis=1, keepdims=True)
        ss = ss + jnp.sum(z * z, axis=1, keepdims=True)

    mean = s * inv_n                                     # (TCout, 1)
    var = ss * inv_n - mean * mean                       # biased variance (PyTorch IN)
    # TODO(synk): switch to shifted/Welford accumulation if 4*H*W grows enough to cause cancellation.
    inv_std = lax.rsqrt(var + EPS)
    scale = gb_ref[:, 0:1] * inv_std                     # gamma / std
    shift = gb_ref[:, 1:2] - mean * scale                # beta - mean*scale

    # Sweep 2: normalize + LeakyReLU(0.2), write bf16 phase outputs.
    for p in range(4):
        y = z_ref[p] * scale + shift
        out_ref[p] = jnp.maximum(y, NEG_SLOPE * y).astype(out_ref.dtype)


def _pick_cout_tile(cout):
    """Largest multiple-of-8 divisor of cout that is <= 256 (MXU/sublane friendly), else full dim."""
    cand = (min(cout, 256) // 8) * 8
    while cand >= 8:
        if cout % cand == 0:
            return cand
        cand -= 8
    return cout


def _vmem_capacity_bytes():
    try:
        return int(pltpu.get_tpu_info().vmem_capacity_bytes)
    except Exception:
        return 128 * 1024 * 1024   # v5e/v6e physical VMEM fallback


@jax.jit
def upconv_pallas(x, w, b, gamma, beta):
    """x: (N, Cin, H, W) f32 NCHW; w: (Cin, Cout, 4, 4) (PyTorch ConvTranspose2d layout)."""
    del b  # per-channel constant shift cancels exactly under affine InstanceNorm
    N, Cin, H, W = x.shape
    Cout = w.shape[1]
    P = H * W
    K9 = 9 * Cin

    # ---- XLA glue (all bf16): de-duplicated sub-pixel im2col -----------------------------------
    # The 4 phases together use only 9 distinct shifted copies of x; tap index = r0*3 + c0.
    xb = x.astype(jnp.bfloat16)
    xp = jnp.pad(xb, ((0, 0), (0, 0), (1, 1), (1, 1)))
    taps = [xp[:, :, r0:r0 + H, c0:c0 + W] for r0 in range(3) for c0 in range(3)]
    patches = jnp.stack(taps, axis=1).reshape(N, K9, P)                # (N, 9*Cin, P) bf16

    # Per-phase weight matrices over the shared 9-tap layout (zeros on unused taps).
    wT = jnp.transpose(w, (1, 0, 2, 3)).astype(jnp.float32)            # (Cout, Cin, KH, KW)
    zblk = jnp.zeros((Cout, Cin), jnp.float32)
    phase_w = []
    for ph in range(2):
        for pw in range(2):
            used = {}
            for th in range(2):
                for tw in range(2):
                    tap = OFF[ph][th] * 3 + OFF[pw][tw]
                    used[tap] = wT[:, :, KTAP[ph][th], KTAP[pw][tw]]
            phase_w.append(jnp.concatenate([used.get(t, zblk) for t in range(9)], axis=1))
    wmats = jnp.stack(phase_w, axis=0).astype(jnp.bfloat16)            # (4, Cout, 9*Cin)
    gb = jnp.stack([gamma, beta], axis=1).astype(jnp.float32)          # (Cout, 2)

    # ---- grid / tiling --------------------------------------------------------------------------
    tcout = _pick_cout_tile(Cout)     # Cout tiles are fully independent under InstanceNorm
    ct = Cout // tcout
    # TODO(synk): for very large H*W (v7x 64 MiB VMEM) add a P-tile grid axis with a two-sweep
    # (stats sweep, then normalize sweep) pipeline instead of one resident (9*Cin, P) block.

    vmem_need = (2 * K9 * P * 2             # patch block, double-buffered, bf16
                 + 2 * 4 * tcout * K9 * 2   # weight block
                 + 2 * tcout * 2 * 4        # gamma/beta
                 + 2 * 4 * tcout * P * 2    # output block, bf16
                 + 4 * tcout * P * 4)       # f32 pre-norm scratch (single buffer)
    vmem_limit = int(min(max(2 * vmem_need, 8 * 1024 * 1024),
                         int(0.75 * _vmem_capacity_bytes())))

    out = pl.pallas_call(
        upconv_kernel,
        out_shape=jax.ShapeDtypeStruct((N, 4, Cout, P), jnp.bfloat16),
        grid=(N, ct),
        in_specs=[
            pl.BlockSpec((pl.Squeezed(), K9, P), lambda n, c: (n, 0, 0)),   # per-sample, phase-invariant
            pl.BlockSpec((4, tcout, K9), lambda n, c: (0, c, 0)),           # all 4 phase weights at once
            pl.BlockSpec((tcout, 2), lambda n, c: (c, 0)),
        ],
        out_specs=pl.BlockSpec((pl.Squeezed(), 4, tcout, P), lambda n, c: (n, 0, c, 0)),
        scratch_shapes=[pltpu.VMEM((4, tcout, P), jnp.float32)],
        compiler_params=pltpu.CompilerParams(
            dimension_semantics=("parallel", "parallel"),  # both axes independent (per-channel IN stats)
            vmem_limit_bytes=vmem_limit,
        ),
        cost_estimate=pl.CostEstimate(
            flops=2 * N * 4 * Cout * K9 * P,
            transcendentals=N * Cout,
            bytes_accessed=patches.size * 2 + wmats.size * 2 + gb.size * 4 + N * 4 * Cout * P * 2,
        ),
    )(patches, wmats, gb)

    # Depth-to-space reassembly of the 4 sub-pixel phases (done in bf16 -> half the HBM pass):
    # out[n, ph*2+pw, co, m*W+nn] = y[n, co, 2m+ph, 2nn+pw]
    # TODO(synk): fold this interleave into the next layer's im2col instead of materializing NCHW.
    out = out.reshape(N, 2, 2, Cout, H, W)
    out = jnp.transpose(out, (0, 3, 4, 1, 5, 2)).reshape(N, Cout, STRIDE * H, STRIDE * W)
    return out.astype(jnp.float32)


def upconv_reference(x, w, b, gamma, beta):
    """Independent reference: lax dilated conv (== ConvTranspose2d) + InstanceNorm + LeakyReLU."""
    w_hwio = jnp.transpose(w[:, :, ::-1, ::-1], (2, 3, 0, 1))            # (KH, KW, Cin, Cout)
    y = lax.conv_general_dilated(
        x, w_hwio, window_strides=(1, 1), padding=((2, 2), (2, 2)),
        lhs_dilation=(STRIDE, STRIDE),
        dimension_numbers=("NCHW", "HWIO", "NCHW"),
        precision=lax.Precision.HIGHEST)
    y = y + b[None, :, None, None]
    mean = y.mean(axis=(2, 3), keepdims=True)
    var = ((y - mean) ** 2).mean(axis=(2, 3), keepdims=True)
    yn = (y - mean) / jnp.sqrt(var + EPS)
    yn = yn * gamma[None, :, None, None] + beta[None, :, None, None]
    return jnp.where(yn >= 0, yn, NEG_SLOPE * yn)


if __name__ == "__main__":
    key = jax.random.PRNGKey(0)
    kx, kw, kb, kg, kbe = jax.random.split(key, 5)

    N, dim_in, dim_out, H, W = 2, 4, 8, 16, 16
    x = jax.random.normal(kx, (N, dim_in, H, W), jnp.float32)
    # ConvTranspose2d weight: (in_channels, out_channels, KH, KW); bias: (out_channels,)
    w = 0.1 * jax.random.normal(kw, (dim_in, dim_out, KH, KW), jnp.float32)
    b = 0.05 * jax.random.normal(kb, (dim_out,), jnp.float32)
    # InstanceNorm2d affine params
    gamma = 1.0 + 0.1 * jax.random.normal(kg, (dim_out,), jnp.float32)
    beta = 0.1 * jax.random.normal(kbe, (dim_out,), jnp.float32)

    out = jax.block_until_ready(upconv_pallas(x, w, b, gamma, beta))
    assert out.shape == (N, dim_out, 2 * H, 2 * W)

    # (1) Tight check against a reference fed the SAME bf16-rounded GEMM operands (isolates the
    #     kernel/algorithm from the intentional bf16 casts; tolerance covers the bf16 output store).
    x_r = x.astype(jnp.bfloat16).astype(jnp.float32)
    w_r = w.astype(jnp.bfloat16).astype(jnp.float32)
    ref_r = upconv_reference(x_r, w_r, b, gamma, beta)
    err_r = float(jnp.max(jnp.abs(out - ref_r)))
    assert jnp.allclose(out, ref_r, rtol=1e-2, atol=2e-3), err_r

    # (2) End-to-end semantic check against the full f32 reference (allows bf16 operand/output rounding).
    ref_f = upconv_reference(x, w, b, gamma, beta)
    err_f = float(jnp.max(jnp.abs(out - ref_f)))
    assert jnp.allclose(out, ref_f, rtol=8e-2, atol=8e-2), err_f

    print("KERNEL_OK")
</pallas_src>

<mosaic_0001>
module attributes {stable_mosaic.version = 11 : i64} {
  func.func @upconv_kernel(%arg0: i32, %arg1: i32, %arg2: memref<1x36x256xbf16, #tpu.memory_space<vmem>>, %arg3: memref<4x8x36xbf16, #tpu.memory_space<vmem>>, %arg4: memref<8x2xf32, #tpu.memory_space<vmem>>, %arg5: memref<1x4x8x256xbf16, #tpu.memory_space<vmem>>, %arg6: memref<4x8x256xf32, #tpu.memory_space<vmem>>) attributes {dimension_semantics = [#tpu.dimension_semantics<parallel>, #tpu.dimension_semantics<parallel>], iteration_bounds = array<i64: 2, 1>, scalar_prefetch = 0 : i64, scratch_operands = 1 : i64, tpu.core_type = #tpu.core_type<tc>, window_params = [{transform_indices = @transform_0, window_bounds = array<i64: 1, 36, 256>}, {transform_indices = @transform_1, window_bounds = array<i64: 4, 8, 36>}, {transform_indices = @transform_2, window_bounds = array<i64: 8, 2>}, {transform_indices = @transform_3, window_bounds = array<i64: 1, 4, 8, 256>}]} {
    %cst = arith.constant 0.000000e+00 : f32
    %0 = vector.broadcast %cst : f32 to vector<8x1xf32>
    %cst_0 = arith.constant 0.000000e+00 : f32
    %1 = vector.broadcast %cst_0 : f32 to vector<8x1xf32>
    %c0 = arith.constant 0 : index
    %c0_1 = arith.constant 0 : index
    %c0_2 = arith.constant 0 : index
    %2 = vector.load %arg3[%c0, %c0_1, %c0_2] : memref<4x8x36xbf16, #tpu.memory_space<vmem>>, vector<1x8x36xbf16>
    %3 = vector.shape_cast %2 : vector<1x8x36xbf16> to vector<8x36xbf16>
    %c0_3 = arith.constant 0 : index
    %c0_4 = arith.constant 0 : index
    %c0_5 = arith.constant 0 : index
    %4 = vector.load %arg2[%c0_3, %c0_4, %c0_5] : memref<1x36x256xbf16, #tpu.memory_space<vmem>>, vector<1x36x256xbf16>
    %5 = vector.shape_cast %4 : vector<1x36x256xbf16> to vector<36x256xbf16>
    %cst_6 = arith.constant dense<0.000000e+00> : vector<8x256xf32>
    %6 = tpu.matmul %3, %5, %cst_6 {dimension_numbers = #tpu.dot_dimension_numbers<[1], [0], [0], [1], [0, 0, 1, 1], [], []>} : vector<8x36xbf16>, vector<36x256xbf16>, vector<8x256xf32> -> vector<8x256xf32>
    %c0_7 = arith.constant 0 : index
    %c0_8 = arith.constant 0 : index
    %c0_9 = arith.constant 0 : index
    %7 = vector.load %arg6[%c0_7, %c0_8, %c0_9] : memref<4x8x256xf32, #tpu.memory_space<vmem>>, vector<1x8x256xf32>
    %8 = vector.shape_cast %7 : vector<1x8x256xf32> to vector<8x256xf32>
    %9 = vector.shape_cast %6 : vector<8x256xf32> to vector<1x8x256xf32>
    tpu.vector_store %arg6[%c0_7, %c0_8, %c0_9], %9 {strides = array<i32>} : memref<4x8x256xf32, #tpu.memory_space<vmem>>, vector<1x8x256xf32>,
    %cst_10 = arith.constant dense<0.000000e+00> : vector<8xf32>
    %10 = vector.multi_reduction <add>, %6, %cst_10 [1] : vector<8x256xf32> to vector<8xf32>
    %11 = vector.shape_cast %10 : vector<8xf32> to vector<8x1xf32>
    %12 = arith.addf %0, %11 : vector<8x1xf32>
    %13 = arith.mulf %6, %6 : vector<8x256xf32>
    %cst_11 = arith.constant dense<0.000000e+00> : vector<8xf32>
    %14 = vector.multi_reduction <add>, %13, %cst_11 [1] : vector<8x256xf32> to vector<8xf32>
    %15 = vector.shape_cast %14 : vector<8xf32> to vector<8x1xf32>
    %16 = arith.addf %1, %15 : vector<8x1xf32>
    %c1 = arith.constant 1 : index
    %c0_12 = arith.constant 0 : index
    %c0_13 = arith.constant 0 : index
    %17 = vector.load %arg3[%c1, %c0_12, %c0_13] : memref<4x8x36xbf16, #tpu.memory_space<vmem>>, vector<1x8x36xbf16>
    %18 = vector.shape_cast %17 : vector<1x8x36xbf16> to vector<8x36xbf16>
    %c0_14 = arith.constant 0 : index
    %c0_15 = arith.constant 0 : index
    %c0_16 = arith.constant 0 : index
    %19 = vector.load %arg2[%c0_14, %c0_15, %c0_16] : memref<1x36x256xbf16, #tpu.memory_space<vmem>>, vector<1x36x256xbf16>
    %20 = vector.shape_cast %19 : vector<1x36x256xbf16> to vector<36x256xbf16>
    %cst_17 = arith.constant dense<0.000000e+00> : vector<8x256xf32>
    %21 = tpu.matmul %18, %20, %cst_17 {dimension_numbers = #tpu.dot_dimension_numbers<[1], [0], [0], [1], [0, 0, 1, 1], [], []>} : vector<8x36xbf16>, vector<36x256xbf16>, vector<8x256xf32> -> vector<8x256xf32>
    %c1_18 = arith.constant 1 : index
    %c0_19 = arith.constant 0 : index
    %c0_20 = arith.constant 0 : index
    %22 = vector.load %arg6[%c1_18, %c0_19, %c0_20] : memref<4x8x256xf32, #tpu.memory_space<vmem>>, vector<1x8x256xf32>
    %23 = vector.shape_cast %22 : vector<1x8x256xf32> to vector<8x256xf32>
    %24 = vector.shape_cast %21 : vector<8x256xf32> to vector<1x8x256xf32>
    tpu.vector_store %arg6[%c1_18, %c0_19, %c0_20], %24 {strides = array<i32>} : memref<4x8x256xf32, #tpu.memory_space<vmem>>, vector<1x8x256xf32>,
    %cst_21 = arith.constant dense<0.000000e+00> : vector<8xf32>
    %25 = vector.multi_reduction <add>, %21, %cst_21 [1] : vector<8x256xf32> to vector<8xf32>
    %26 = vector.shape_cast %25 : vector<8xf32> to vector<8x1xf32>
    %27 = arith.addf %12, %26 : vector<8x1xf32>
    %28 = arith.mulf %21, %21 : vector<8x256xf32>
    %cst_22 = arith.constant dense<0.000000e+00> : vector<8xf32>
    %29 = vector.multi_reduction <add>, %28, %cst_22 [1] : vector<8x256xf32> to vector<8xf32>
    %30 = vector.shape_cast %29 : vector<8xf32> to vector<8x1xf32>
    %31 = arith.addf %16, %30 : vector<8x1xf32>
    %c2 = arith.constant 2 : index
    %c0_23 = arith.constant 0 : index
    %c0_24 = arith.constant 0 : index
    %32 = vector.load %arg3[%c2, %c0_23, %c0_24] : memref<4x8x36xbf16, #tpu.memory_space<vmem>>, vector<1x8x36xbf16>
    %33 = vector.shape_cast %32 : vector<1x8x36xbf16> to vector<8x36xbf16>
    %c0_25 = arith.constant 0 : index
    %c0_26 = arith.constant 0 : index
    %c0_27 = arith.constant 0 : index
    %34 = vector.load %arg2[%c0_25, %c0_26, %c0_27] : memref<1x36x256xbf16, #tpu.memory_space<vmem>>, vector<1x36x256xbf16>
    %35 = vector.shape_cast %34 : vector<1x36x256xbf16> to vector<36x256xbf16>
    %cst_28 = arith.constant dense<0.000000e+00> : vector<8x256xf32>
    %36 = tpu.matmul %33, %35, %cst_28 {dimension_numbers = #tpu.dot_dimension_numbers<[1], [0], [0], [1], [0, 0, 1, 1], [], []>} : vector<8x36xbf16>, vector<36x256xbf16>, vector<8x256xf32> -> vector<8x256xf32>
    %c2_29 = arith.constant 2 : index
    %c0_30 = arith.constant 0 : index
    %c0_31 = arith.constant 0 : index
    %37 = vector.load %arg6[%c2_29, %c0_30, %c0_31] : memref<4x8x256xf32, #tpu.memory_space<vmem>>, vector<1x8x256xf32>
    %38 = vector.shape_cast %37 : vector<1x8x256xf32> to vector<8x256xf32>
    %39 = vector.shape_cast %36 : vector<8x256xf32> to vector<1x8x256xf32>
    tpu.vector_store %arg6[%c2_29, %c0_30, %c0_31], %39 {strides = array<i32>} : memref<4x8x256xf32, #tpu.memory_space<vmem>>, vector<1x8x256xf32>,
    %cst_32 = arith.constant dense<0.000000e+00> : vector<8xf32>
    %40 = vector.multi_reduction <add>, %36, %cst_32 [1] : vector<8x256xf32> to vector<8xf32>
    %41 = vector.shape_cast %40 : vector<8xf32> to vector<8x1xf32>
    %42 = arith.addf %27, %41 : vector<8x1xf32>
    %43 = arith.mulf %36, %36 : vector<8x256xf32>
    %cst_33 = arith.constant dense<0.000000e+00> : vector<8xf32>
    %44 = vector.multi_reduction <add>, %43, %cst_33 [1] : vector<8x256xf32> to vector<8xf32>
    %45 = vector.shape_cast %44 : vector<8xf32> to vector<8x1xf32>
    %46 = arith.addf %31, %45 : vector<8x1xf32>
    %c3 = arith.constant 3 : index
    %c0_34 = arith.constant 0 : index
    %c0_35 = arith.constant 0 : index
    %47 = vector.load %arg3[%c3, %c0_34, %c0_35] : memref<4x8x36xbf16, #tpu.memory_space<vmem>>, vector<1x8x36xbf16>
    %48 = vector.shape_cast %47 : vector<1x8x36xbf16> to vector<8x36xbf16>
    %c0_36 = arith.constant 0 : index
    %c0_37 = arith.constant 0 : index
    %c0_38 = arith.constant 0 : index
    %49 = vector.load %arg2[%c0_36, %c0_37, %c0_38] : memref<1x36x256xbf16, #tpu.memory_space<vmem>>, vector<1x36x256xbf16>
    %50 = vector.shape_cast %49 : vector<1x36x256xbf16> to vector<36x256xbf16>
    %cst_39 = arith.constant dense<0.000000e+00> : vector<8x256xf32>
    %51 = tpu.matmul %48, %50, %cst_39 {dimension_numbers = #tpu.dot_dimension_numbers<[1], [0], [0], [1], [0, 0, 1, 1], [], []>} : vector<8x36xbf16>, vector<36x256xbf16>, vector<8x256xf32> -> vector<8x256xf32>
    %c3_40 = arith.constant 3 : index
    %c0_41 = arith.constant 0 : index
    %c0_42 = arith.constant 0 : index
    %52 = vector.load %arg6[%c3_40, %c0_41, %c0_42] : memref<4x8x256xf32, #tpu.memory_space<vmem>>, vector<1x8x256xf32>
    %53 = vector.shape_cast %52 : vector<1x8x256xf32> to vector<8x256xf32>
    %54 = vector.shape_cast %51 : vector<8x256xf32> to vector<1x8x256xf32>
    tpu.vector_store %arg6[%c3_40, %c0_41, %c0_42], %54 {strides = array<i32>} : memref<4x8x256xf32, #tpu.memory_space<vmem>>, vector<1x8x256xf32>,
    %cst_43 = arith.constant dense<0.000000e+00> : vector<8xf32>
    %55 = vector.multi_reduction <add>, %51, %cst_43 [1] : vector<8x256xf32> to vector<8xf32>
    %56 = vector.shape_cast %55 : vector<8xf32> to vector<8x1xf32>
    %57 = arith.addf %42, %56 : vector<8x1xf32>
    %58 = arith.mulf %51, %51 : vector<8x256xf32>
    %cst_44 = arith.constant dense<0.000000e+00> : vector<8xf32>
    %59 = vector.multi_reduction <add>, %58, %cst_44 [1] : vector<8x256xf32> to vector<8xf32>
    %60 = vector.shape_cast %59 : vector<8xf32> to vector<8x1xf32>
    %61 = arith.addf %46, %60 : vector<8x1xf32>
    %cst_45 = arith.constant 9.765625E-4 : f32
    %62 = vector.broadcast %cst_45 : f32 to vector<8x1xf32>
    %63 = arith.mulf %57, %62 : vector<8x1xf32>
    %cst_46 = arith.constant 9.765625E-4 : f32
    %64 = vector.broadcast %cst_46 : f32 to vector<8x1xf32>
    %65 = arith.mulf %61, %64 : vector<8x1xf32>
    %66 = arith.mulf %63, %63 : vector<8x1xf32>
    %67 = arith.subf %65, %66 : vector<8x1xf32>
    %cst_47 = arith.constant 9.99999974E-6 : f32
    %68 = vector.broadcast %cst_47 : f32 to vector<8x1xf32>
    %69 = arith.addf %67, %68 : vector<8x1xf32>
    %70 = math.rsqrt %69 : vector<8x1xf32>
    %c0_48 = arith.constant 0 : index
    %c0_49 = arith.constant 0 : index
    %71 = vector.load %arg4[%c0_48, %c0_49] : memref<8x2xf32, #tpu.memory_space<vmem>>, vector<8x1xf32>
    %72 = arith.mulf %71, %70 : vector<8x1xf32>
    %c0_50 = arith.constant 0 : index
    %c1_51 = arith.constant 1 : index
    %73 = vector.load %arg4[%c0_50, %c1_51] : memref<8x2xf32, #tpu.memory_space<vmem>>, vector<8x1xf32>
    %74 = arith.mulf %63, %72 : vector<8x1xf32>
    %75 = arith.subf %73, %74 : vector<8x1xf32>
    %c0_52 = arith.constant 0 : index
    %c0_53 = arith.constant 0 : index
    %c0_54 = arith.constant 0 : index
    %76 = vector.load %arg6[%c0_52, %c0_53, %c0_54] : memref<4x8x256xf32, #tpu.memory_space<vmem>>, vector<1x8x256xf32>
    %77 = vector.shape_cast %76 : vector<1x8x256xf32> to vector<8x256xf32>
    %78 = vector.broadcast %72 : vector<8x1xf32> to vector<8x256xf32>
    %79 = arith.mulf %77, %78 : vector<8x256xf32>
    %80 = vector.broadcast %75 : vector<8x1xf32> to vector<8x256xf32>
    %81 = arith.addf %79, %80 : vector<8x256xf32>
    %cst_55 = arith.constant 2.000000e-01 : f32
    %82 = vector.broadcast %cst_55 : f32 to vector<8x256xf32>
    %83 = arith.mulf %82, %81 : vector<8x256xf32>
    %84 = arith.maximumf %81, %83 : vector<8x256xf32>
    %85 = arith.truncf %84 : vector<8x256xf32> to vector<8x256xbf16>
    %c0_56 = arith.constant 0 : index
    %c0_57 = arith.constant 0 : index
    %c0_58 = arith.constant 0 : index
    %c0_59 = arith.constant 0 : index
    %86 = vector.load %arg5[%c0_56, %c0_57, %c0_58, %c0_59] : memref<1x4x8x256xbf16, #tpu.memory_space<vmem>>, vector<1x1x8x256xbf16>
    %87 = vector.shape_cast %86 : vector<1x1x8x256xbf16> to vector<8x256xbf16>
    %88 = vector.shape_cast %85 : vector<8x256xbf16> to vector<1x1x8x256xbf16>
    tpu.vector_store %arg5[%c0_56, %c0_57, %c0_58, %c0_59], %88 {strides = array<i32>} : memref<1x4x8x256xbf16, #tpu.memory_space<vmem>>, vector<1x1x8x256xbf16>,
    %c1_60 = arith.constant 1 : index
    %c0_61 = arith.constant 0 : index
    %c0_62 = arith.constant 0 : index
    %89 = vector.load %arg6[%c1_60, %c0_61, %c0_62] : memref<4x8x256xf32, #tpu.memory_space<vmem>>, vector<1x8x256xf32>
    %90 = vector.shape_cast %89 : vector<1x8x256xf32> to vector<8x256xf32>
    %91 = vector.broadcast %72 : vector<8x1xf32> to vector<8x256xf32>
    %92 = arith.mulf %90, %91 : vector<8x256xf32>
    %93 = vector.broadcast %75 : vector<8x1xf32> to vector<8x256xf32>
    %94 = arith.addf %92, %93 : vector<8x256xf32>
    %cst_63 = arith.constant 2.000000e-01 : f32
    %95 = vector.broadcast %cst_63 : f32 to vector<8x256xf32>
    %96 = arith.mulf %95, %94 : vector<8x256xf32>
    %97 = arith.maximumf %94, %96 : vector<8x256xf32>
    %98 = arith.truncf %97 : vector<8x256xf32> to vector<8x256xbf16>
    %c0_64 = arith.constant 0 : index
    %c1_65 = arith.constant 1 : index
    %c0_66 = arith.constant 0 : index
    %c0_67 = arith.constant 0 : index
    %99 = vector.load %arg5[%c0_64, %c1_65, %c0_66, %c0_67] : memref<1x4x8x256xbf16, #tpu.memory_space<vmem>>, vector<1x1x8x256xbf16>
    %100 = vector.shape_cast %99 : vector<1x1x8x256xbf16> to vector<8x256xbf16>
    %101 = vector.shape_cast %98 : vector<8x256xbf16> to vector<1x1x8x256xbf16>
    tpu.vector_store %arg5[%c0_64, %c1_65, %c0_66, %c0_67], %101 {strides = array<i32>} : memref<1x4x8x256xbf16, #tpu.memory_space<vmem>>, vector<1x1x8x256xbf16>,
    %c2_68 = arith.constant 2 : index
    %c0_69 = arith.constant 0 : index
    %c0_70 = arith.constant 0 : index
    %102 = vector.load %arg6[%c2_68, %c0_69, %c0_70] : memref<4x8x256xf32, #tpu.memory_space<vmem>>, vector<1x8x256xf32>
    %103 = vector.shape_cast %102 : vector<1x8x256xf32> to vector<8x256xf32>
    %104 = vector.broadcast %72 : vector<8x1xf32> to vector<8x256xf32>
    %105 = arith.mulf %103, %104 : vector<8x256xf32>
    %106 = vector.broadcast %75 : vector<8x1xf32> to vector<8x256xf32>
    %107 = arith.addf %105, %106 : vector<8x256xf32>
    %cst_71 = arith.constant 2.000000e-01 : f32
    %108 = vector.broadcast %cst_71 : f32 to vector<8x256xf32>
    %109 = arith.mulf %108, %107 : vector<8x256xf32>
    %110 = arith.maximumf %107, %109 : vector<8x256xf32>
    %111 = arith.truncf %110 : vector<8x256xf32> to vector<8x256xbf16>
    %c0_72 = arith.constant 0 : index
    %c2_73 = arith.constant 2 : index
    %c0_74 = arith.constant 0 : index
    %c0_75 = arith.constant 0 : index
    %112 = vector.load %arg5[%c0_72, %c2_73, %c0_74, %c0_75] : memref<1x4x8x256xbf16, #tpu.memory_space<vmem>>, vector<1x1x8x256xbf16>
    %113 = vector.shape_cast %112 : vector<1x1x8x256xbf16> to vector<8x256xbf16>
    %114 = vector.shape_cast %111 : vector<8x256xbf16> to vector<1x1x8x256xbf16>
    tpu.vector_store %arg5[%c0_72, %c2_73, %c0_74, %c0_75], %114 {strides = array<i32>} : memref<1x4x8x256xbf16, #tpu.memory_space<vmem>>, vector<1x1x8x256xbf16>,
    %c3_76 = arith.constant 3 : index
    %c0_77 = arith.constant 0 : index
    %c0_78 = arith.constant 0 : index
    %115 = vector.load %arg6[%c3_76, %c0_77, %c0_78] : memref<4x8x256xf32, #tpu.memory_space<vmem>>, vector<1x8x256xf32>
    %116 = vector.shape_cast %115 : vector<1x8x256xf32> to vector<8x256xf32>
    %117 = vector.broadcast %72 : vector<8x1xf32> to vector<8x256xf32>
    %118 = arith.mulf %116, %117 : vector<8x256xf32>
    %119 = vector.broadcast %75 : vector<8x1xf32> to vector<8x256xf32>
    %120 = arith.addf %118, %119 : vector<8x256xf32>
    %cst_79 = arith.constant 2.000000e-01 : f32
    %121 = vector.broadcast %cst_79 : f32 to vector<8x256xf32>
    %122 = arith.mulf %121, %120 : vector<8x256xf32>
    %123 = arith.maximumf %120, %122 : vector<8x256xf32>
    %124 = arith.truncf %123 : vector<8x256xf32> to vector<8x256xbf16>
    %c0_80 = arith.constant 0 : index
    %c3_81 = arith.constant 3 : index
    %c0_82 = arith.constant 0 : index
    %c0_83 = arith.constant 0 : index
    %125 = vector.load %arg5[%c0_80, %c3_81, %c0_82, %c0_83] : memref<1x4x8x256xbf16, #tpu.memory_space<vmem>>, vector<1x1x8x256xbf16>
    %126 = vector.shape_cast %125 : vector<1x1x8x256xbf16> to vector<8x256xbf16>
    %127 = vector.shape_cast %124 : vector<8x256xbf16> to vector<1x1x8x256xbf16>
    tpu.vector_store %arg5[%c0_80, %c3_81, %c0_82, %c0_83], %127 {strides = array<i32>} : memref<1x4x8x256xbf16, #tpu.memory_space<vmem>>, vector<1x1x8x256xbf16>,
    return
  }
  func.func @transform_0(%arg0: i32, %arg1: i32) -> (i32, i32, i32) {
    %c0_i32 = arith.constant 0 : i32
    %c0_i32_0 = arith.constant 0 : i32
    %c0_i32_1 = arith.constant 0 : i32
    return %arg0, %c0_i32, %c0_i32_0 : i32, i32, i32
  }
  func.func @transform_1(%arg0: i32, %arg1: i32) -> (i32, i32, i32) {
    %c0_i32 = arith.constant 0 : i32
    %c0_i32_0 = arith.constant 0 : i32
    %c0_i32_1 = arith.constant 0 : i32
    return %c0_i32, %arg1, %c0_i32_0 : i32, i32, i32
  }
  func.func @transform_2(%arg0: i32, %arg1: i32) -> (i32, i32) {
    %c0_i32 = arith.constant 0 : i32
    %c0_i32_0 = arith.constant 0 : i32
    return %arg1, %c0_i32 : i32, i32
  }
  func.func @transform_3(%arg0: i32, %arg1: i32) -> (i32, i32, i32, i32) {
    %c0_i32 = arith.constant 0 : i32
    %c0_i32_0 = arith.constant 0 : i32
    %c0_i32_1 = arith.constant 0 : i32
    return %arg0, %c0_i32, %arg1, %c0_i32_0 : i32, i32, i32, i32
  }
}

</mosaic_0001>

<bundles_post_ra>
// kernel: upconv_pallas.1
= control target key start
LH: loop header
LB: loop body
LE: loop exit
PB: predicated region body
PF: predicated region fallthrough
CT: control target
= control target key end

     0   :  { %s978_s12 = smov 0   ;;  %s980_s13 = smov 0   ;;  %s1066_s0 = inlined_call_operand.vmem [shape: bf16[2,36,256], index: 0, kind: input, shape index: {}]   ;;  %s1067_s1 = inlined_call_operand.vmem [shape: bf16[4,8,36], index: 1, kind: input, shape index: {}]   ;;  %s1068_s2 = inlined_call_operand.vmem [shape: f32[8,2], index: 2, kind: input, shape index: {}]   ;;  %s1069_s3 = inlined_call_operand.vmem [shape: bf16[2,4,8,256], index: 3, kind: output, shape index: {}]  }
   0x1   :  { %s982_s14 = smov 0  }
   0x2 LB: > { %s25_s15 = sadd.s32 1, %s949_s13  ;;  %p831_p0 = scmp.ge.s32.totalorder %s953_s14, 1  ;;  %s953_s14 = sphi %s982_s14, %s13_s14   ;;  %s949_s13 = sphi %s980_s13, %s1071_s13   ;;  %s945_s12 = sphi %s978_s12, %s1070_s12  }
   0x3   : > { %p27_p1 = scmp.ge.s32.totalorder %s25_s15, 2  ;;  %p169_p2 = scmp.lt.s32.totalorder %s953_s14, 3 }
   0x5   : > { %s1073_s15 = smov (%p27_p1, %s25_s15), 0  ;;  %p170_p3 = pnand %p831_p0, %p169_p2 }
   0x6   : > { %p205_p4 = scmp.lt.s32.totalorder (!%p170_p3), %s945_s12, 1  ;;  %s957_s30 = smov (!%p170_p3), 1  }
   0x7   : > { %173 = sbr.rel (%p170_p3) target bundleno = 663 (0x297), region = 32 }
   0xc   : > { %v955_v0 = vmov 0   ;;  %s1075_s12 = smov (!%p205_p4, %s945_s12), 1  ;;  %vm263_vm0 = vcmask 1041408   ;;  %v228_v19 = vld [vmem:[%s1067_s1] sm:$0xf]  ;;  %vm259_vm1 = vcmask 293888  }
   0xd   : > { %302 = vmatprep.mubr.bf16.mxu0 %v955_v0  ;;  %396 = vmatprep.mubr.bf16.mxu1 %v955_v0  ;;  %s884_s16 = smul.u32 40, %s1075_s12  ;;  %v843_v20 = vld [vmem:[%s1067_s1 + $0x4] sm:$0xf]  ;;  %v852_v23 = vld [vmem:[%s1067_s1 + $0x8] sm:$0xf]  ;;  %s879_s4 = sshll.u32 %s1075_s12, 5 }
   0xe   : > { %912 = vset.pattern.permute.xlu1 %v955_v0  ;;  %v861_v24 = vld [vmem:[%s1067_s1 + $0xc] sm:$0xf]  ;;  %s226_s7 = scalar_lea.vmem %s1069_s3, %s879_s4 }
   0xf   : > { %s209_s19 = scalar_lea.vmem %s1066_s0, %s884_s16 }
  0x10   : > { %v233_v1 = vld [vmem:[%s209_s19 + $0x20] sm:$0x33]  ;;  %v919_v7 = vld [vmem:[%s209_s19 + $0x14] ss:$8 sps:$4 sm:$0xff]   ;;  %v921_v10 = vld [vmem:[%s209_s19 + $0x10] ss:$8 sps:$4 sm:$0xff]  }
  0x11   : > { %v329_v2 = vld [vmem:[%s209_s19 + $0x20] sm:$0x33]  ;;  %v840_v3 = vcombine.high %v233_v1, %v233_v1  ;;  %v839_v5 = vcombine.low %v233_v1, %v233_v1 }
  0x12   : > { %v849_v4 = vcombine.high %v329_v2, %v329_v2  ;;  %v848_v6 = vcombine.low %v329_v2, %v329_v2  ;;  %v922_v11 = vld [vmem:[%s209_s19 + $0x4] ss:$8 sps:$4 sm:$0xff]   ;;  %v924_v14 = vld [vmem:[%s209_s19] ss:$8 sps:$4 sm:$0xff]  }
  0x13   : > { %841 = vmatprep.subr.msk.bf16.mxu0 %vm263_vm0, %v840_v3  ;;  %v265_v8 = vsel %vm263_vm0, %v839_v5, 0  ;;  %v424_v12 = vld [vmem:[%s209_s19 + $0x20] sm:$0x33] }
  0x14   : > { %850 = vmatprep.subr.msk.bf16.mxu1 %vm263_vm0, %v849_v4  ;;  %v359_v9 = vsel %vm263_vm0, %v848_v6, 0  ;;  %281 = vmatpush1.bf16.msra.mxu0 %v265_v8  ;;  %v519_v13 = vld [vmem:[%s209_s19 + $0x20] sm:$0x33]  ;;  %v858_v15 = vcombine.high %v424_v12, %v424_v12  ;;  %v857_v17 = vcombine.low %v424_v12, %v424_v12  ;;  %v956_v12 = vmov 1  }
  0x15   : > { %375 = vmatpush1.bf16.msra.mxu1 %v359_v9  ;;  %282 = vmatprep.subr.bf16.mxu0 %v919_v7  ;;  %v867_v16 = vcombine.high %v519_v13, %v519_v13  ;;  %v866_v18 = vcombine.low %v519_v13, %v519_v13  ;;  %v614_v13 = vld [vmem:[%s1068_s2] sm:$0xff] }
  0x16   : > { %376 = vmatprep.subr.bf16.mxu1 %v919_v7  ;;  %v454_v21 = vsel %vm263_vm0, %v857_v17, 0  ;;  %914 = vset.pattern.permute.xlu0 %v956_v12 }
  0x17   : > { %v549_v22 = vsel %vm263_vm0, %v866_v18, 0 }
  0x18   : > { %283 = vmatpush1.bf16.msra.mxu0 %v921_v10 }
  0x19   : > { %377 = vmatpush1.bf16.msra.mxu1 %v921_v10  ;;  %284 = vmatprep.subr.bf16.mxu0 %v922_v11 }
  0x1a   : > { %378 = vmatprep.subr.bf16.mxu1 %v922_v11 }
  0x1c   : > { %285 = vmatpush1.bf16.msra.mxu0 %v924_v14 }
  0x1d   : > { %379 = vmatpush1.bf16.msra.mxu1 %v924_v14  ;;  %859 = vmatprep.subr.msk.bf16.mxu0 %vm263_vm0, %v858_v15 }
  0x1e   : > { %868 = vmatprep.subr.msk.bf16.mxu1 %vm263_vm0, %v867_v16 }
  0x1f   : > { %842 = vmatmul.mubr.msk.bf16.vlgmr.msra.gmra.mxu0 %vm259_vm1, %v228_v19 }
  0x20   : > { %851 = vmatmul.mubr.msk.bf16.vlgmr.msra.gmra.mxu1 %vm259_vm1, %v843_v20  ;;  %470 = vmatpush1.bf16.msra.mxu0 %v454_v21 }
  0x21   : > { %565 = vmatpush1.bf16.msra.mxu1 %v549_v22  ;;  %471 = vmatprep.subr.bf16.mxu0 %v919_v7 }
  0x22   : > { %566 = vmatprep.subr.bf16.mxu1 %v919_v7  ;;  %491 = vmatprep.mubr.bf16.mxu0 %v955_v0 }
  0x23   : > { %586 = vmatprep.mubr.bf16.mxu1 %v955_v0 }
  0x24   : > { %472 = vmatpush1.bf16.msra.mxu0 %v921_v10 }
  0x25   : > { %567 = vmatpush1.bf16.msra.mxu1 %v921_v10  ;;  %473 = vmatprep.subr.bf16.mxu0 %v922_v11 }
  0x26   : > { %568 = vmatprep.subr.bf16.mxu1 %v922_v11 }
  0x28   : > { %474 = vmatpush1.bf16.msra.mxu0 %v924_v14 }
  0x29   : > { %569 = vmatpush1.bf16.msra.mxu1 %v924_v14 }
  0x2b   : > { %860 = vmatmul.mubr.msk.bf16.vlgmr.msra.gmra.mxu0 %vm259_vm1, %v852_v23 }
  0x2c   : > { %869 = vmatmul.mubr.msk.bf16.vlgmr.msra.gmra.mxu1 %vm259_vm1, %v861_v24 }
  0xdf   : > { %v1026_v25 = vpop.f32.mrf.mxu0 }
  0xe0   : > { %v1028_v26 = vpop.f32.mrf.mxu1  ;;  %v317_v27 = vmul.f32 %v1026_v25, %v1026_v25 }
  0xe1   : > { %v1032_v28 = vpop.f32.mrf.mxu0  ;;  %v412_v32 = vmul.f32 %v1028_v26, %v1028_v26 }
  0xe2   : > { %v1034_v29 = vpop.f32.mrf.mxu1  ;;  %v313_v30 = vadd.f32 %v1032_v28, %v1026_v25  ;;  %v318_v31 = vmul.f32 %v1032_v28, %v1032_v28 }
  0xe3   : > { %v413_v33 = vmul.f32 %v1034_v29, %v1034_v29  ;;  %v308_v34 = vpop.f32.mrf.mxu0  ;;  %v408_v37 = vadd.f32 %v1034_v29, %v1028_v26 }
  0xe4   : > { %v402_v35 = vpop.f32.mrf.mxu1  ;;  %314 = vadd.xlane.f32.xlu0 %v313_v30  ;;  %v319_v36 = vadd.f32 %v318_v31, %v317_v27 }
  0xe5   : > { %v309_v38 = vpop.f32.mrf.mxu0  ;;  %v414_v40 = vadd.f32 %v413_v33, %v412_v32 }
  0xe6   : > { %v403_v39 = vpop.f32.mrf.mxu1  ;;  %320 = vadd.xlane.f32.xlu1 %v319_v36 }
  0xe8   : > { %409 = vadd.xlane.f32.xlu0 %v408_v37 }
  0xea   : > { %415 = vadd.xlane.f32.xlu1 %v414_v40 }
  0xeb   : > { %v493_v41 = vpop.f32.mrf.mxu0 }
  0xec   : > { %v588_v42 = vpop.f32.mrf.mxu1  ;;  %v507_v46 = vmul.f32 %v493_v41, %v493_v41 }
  0xed   : > { %v495_v43 = vpop.f32.mrf.mxu0  ;;  %v602_v51 = vmul.f32 %v588_v42, %v588_v42 }
  0xee   : > { %v590_v44 = vpop.f32.mrf.mxu1  ;;  %v503_v45 = vadd.f32 %v495_v43, %v493_v41  ;;  %v508_v47 = vmul.f32 %v495_v43, %v495_v43 }
  0xef   : > { %v497_v48 = vpop.f32.mrf.mxu0  ;;  %v603_v52 = vmul.f32 %v590_v44, %v590_v44  ;;  %v598_v55 = vadd.f32 %v590_v44, %v588_v42 }
  0xf0   : > { %v592_v49 = vpop.f32.mrf.mxu1  ;;  %504 = vadd.xlane.f32.xlu0 %v503_v45  ;;  %v509_v50 = vadd.f32 %v508_v47, %v507_v46 }
  0xf1   : > { %v498_v53 = vpop.f32.mrf.mxu0  ;;  %v604_v56 = vadd.f32 %v603_v52, %v602_v51 }
  0xf2   : > { %v593_v54 = vpop.f32.mrf.mxu1  ;;  %510 = vadd.xlane.f32.xlu1 %v509_v50 }
  0xf4   : > { %599 = vadd.xlane.f32.xlu0 %v598_v55 }
  0xf6   : > { %605 = vadd.xlane.f32.xlu1 %v604_v56 }
 0x16d   : > { %v315_v57 = vpop.xlane.xlu0 %314 }
 0x16f   : > { %v321_v58 = vpop.xlane.xlu1 %320 }
 0x171   : > { %v410_v59 = vpop.xlane.xlu0 %409 }
 0x172   : > { %v411_v62 = vadd.f32 %v410_v59, %v315_v57 }
 0x173   : > { %v416_v60 = vpop.xlane.xlu1 %415 }
 0x174   : > { %v417_v0 = vadd.f32 %v416_v60, %v321_v58 }
 0x179   : > { %v505_v61 = vpop.xlane.xlu0 %504 }
 0x17a   : > { %v506_v1 = vadd.f32 %v505_v61, %v411_v62 }
 0x17b   : > { %v511_v63 = vpop.xlane.xlu1 %510 }
 0x17c   : > { %v512_v3 = vadd.f32 %v511_v63, %v417_v0 }
 0x17d   : > { %v600_v2 = vpop.xlane.xlu0 %599 }
 0x17e   : > { %v601_v4 = vadd.f32 %v600_v2, %v506_v1 }
 0x17f   : > { %v606_v5 = vpop.xlane.xlu1 %605 }
 0x180   : > { %v608_v6 = vmul.f32 0.0009765625, %v601_v4  ;;  %v607_v7 = vadd.f32 %v606_v5, %v512_v3 }
 0x182   : > { %v610_v8 = vmul.f32 %v608_v6, %v608_v6  ;;  %v609_v9 = vmul.f32 0.0009765625, %v607_v7 }
 0x184   : > { %v611_v10 = vsub.f32 %v609_v9, %v610_v8 }
 0x186   : > { %v612_v11 = vadd.f32 1e-05, %v611_v10 }
 0x188   : > { %929 = vrsqrt.f32 %v612_v11 }
 0x195   : > { %v930_v14 = vpop.eup %929 }
 0x196   : > { %v615_v15 = vmul.f32 %v930_v14, %v614_v13 }
 0x198   : > { %626 = vperm.xlu1 %912, %v615_v15   ;;  %v616_v16 = vmul.f32 %v615_v15, %v608_v6 }
 0x19a   : > { %618 = vrot.lane.b32.xlu0 %v616_v16, %s957_s30 }
 0x19c   : > { %913 = vset.pattern.permute.xlu1 %v956_v12 }
 0x20c   : > { %v619_v17 = vpop.permute.xlu0 %618 }
 0x20d   : > { %v621_v18 = vsub.f32 %v614_v13, %v619_v17 }
 0x20f   : > { %633 = vperm.xlu1 %913, %v621_v18  }
 0x213   : > { %v627_v19 = vpop.permute.xlu1 %626 }
 0x214   : > { %v629_v20 = vmul.f32 %v627_v19, %v1026_v25  ;;  %v630_v21 = vmul.f32 %v627_v19, %v1032_v28  ;;  %v653_v22 = vmul.f32 %v627_v19, %v1028_v26  ;;  %v654_v23 = vmul.f32 %v627_v19, %v1034_v29 }
 0x215   : > { %v673_v24 = vmul.f32 %v627_v19, %v493_v41  ;;  %v674_v27 = vmul.f32 %v627_v19, %v495_v43  ;;  %v693_v30 = vmul.f32 %v627_v19, %v588_v42  ;;  %v694_v31 = vmul.f32 %v627_v19, %v590_v44 }
 0x28a   : > { %v634_v32 = vpop.permute.xlu1 %633 }
 0x28b   : > { %v636_v33 = vadd.f32 %v634_v32, %v629_v20  ;;  %v637_v34 = vadd.f32 %v634_v32, %v630_v21  ;;  %v655_v35 = vadd.f32 %v653_v22, %v634_v32  ;;  %v656_v36 = vadd.f32 %v654_v23, %v634_v32 }
 0x28c   : > { %v675_v37 = vadd.f32 %v673_v24, %v634_v32  ;;  %v676_v38 = vadd.f32 %v674_v27, %v634_v32  ;;  %v695_v39 = vadd.f32 %v693_v30, %v634_v32  ;;  %v696_v25 = vadd.f32 %v694_v31, %v634_v32 }
 0x28d   : > { %v638_v40 = vmul.f32 0.2, %v636_v33  ;;  %v639_v28 = vmul.f32 0.2, %v637_v34  ;;  %v657_v45 = vmul.f32 0.2, %v655_v35 }
 0x28e   : > { %v658_v26 = vmul.f32 0.2, %v656_v36  ;;  %v677_v46 = vmul.f32 0.2, %v675_v37  ;;  %v678_v29 = vmul.f32 0.2, %v676_v38 }
 0x28f   : > { %v640_v41 = vmax.f32 %v636_v33, %v638_v40  ;;  %v641_v43 = vmax.f32 %v637_v34, %v639_v28  ;;  %v659_v42 = vmax.f32 %v655_v35, %v657_v45  ;;  %v697_v44 = vmul.f32 0.2, %v695_v39 }
 0x290   : > { %v660_v47 = vmax.f32 %v656_v36, %v658_v26  ;;  %v679_v48 = vmax.f32 %v675_v37, %v677_v46  ;;  %v680_v49 = vmax.f32 %v676_v38, %v678_v29  ;;  %v698_v50 = vmul.f32 0.2, %v696_v25 }
 0x291   : > { %v880_v51 = vpack.c.bf16 %v641_v43, %v640_v41  ;;  %v699_v52 = vmax.f32 %v695_v39, %v697_v44 }
 0x292   : > { %v881_v53 = vpack.c.bf16 %v660_v47, %v659_v42  ;;  %v882_v54 = vpack.c.bf16 %v680_v49, %v679_v48  ;;  %v700_v55 = vmax.f32 %v696_v25, %v698_v50 }
 0x293   : > { %650 = vst [vmem:[%s226_s7] sm:$0xff] %v880_v51 }
 0x294   : > { %872 = vst [vmem:[%s226_s7 + $0x8] sm:$0xff] %v881_v53  ;;  %874 = vst [vmem:[%s226_s7 + $0x10] sm:$0xff] %v882_v54  ;;  %v883_v56 = vpack.c.bf16 %v700_v55, %v699_v52 }
 0x296   : > { %876 = vst [vmem:[%s226_s7 + $0x18] sm:$0xff] %v883_v56 }
 0x297 PF: > { %s13_s14 = sadd.s32 1, %s953_s14   ;;  %s1070_s12 = smov %s949_s13 }
 0x298   : > { %p10_p5 = scmp.ge.s32.totalorder %s13_s14, 4   ;;  %s1071_s13 = smov %s1073_s15 }
 0x29a   :  { %12 = sbr.rel (!%p10_p5) target bundleno = 2 (0x2), region = 77 }

</bundles_post_ra>
